<compile_context>
chip_gen: v5e
topology: v5e:2x2
jax: 0.10.0
libtpu: 0.0.40
codegen_flags: <defaults>
</compile_context>

<pallas_src>
import functools

import numpy as np
import jax
import jax.numpy as jnp
from jax.experimental import pallas as pl
from jax.experimental.pallas import tpu as pltpu

LN_EPS = 1e-5  # nn.LayerNorm default eps


# --------------------------------------------------------------------------- #
# Kernels
# --------------------------------------------------------------------------- #
def _proj_kernel(x_ref, w_ref, b_ref, o_ref):
    # x_ref: (TM, K) patch columns, w_ref: (K, E), b_ref: (1, E), o_ref: (TM, E)
    y = jnp.dot(x_ref[...], w_ref[...], preferred_element_type=jnp.float32)
    y = y + b_ref[...].astype(jnp.float32)
    o_ref[...] = y.astype(o_ref.dtype)


def _proj_norm_kernel(x_ref, w_ref, b_ref, g_ref, bt_ref, o_ref):
    # Projection + fused LayerNorm(E); statistics kept in f32 (as in PyTorch).
    y = jnp.dot(x_ref[...], w_ref[...], preferred_element_type=jnp.float32)
    y = y + b_ref[...].astype(jnp.float32)
    mu = jnp.mean(y, axis=-1, keepdims=True)
    c = y - mu
    var = jnp.mean(c * c, axis=-1, keepdims=True)
    y = c * jax.lax.rsqrt(var + LN_EPS)
    y = y * g_ref[...].astype(jnp.float32) + bt_ref[...].astype(jnp.float32)
    o_ref[...] = y.astype(o_ref.dtype)


# --------------------------------------------------------------------------- #
# Wrapper
# --------------------------------------------------------------------------- #
def _round_up(a, b):
    return (a + b - 1) // b * b


def _choose_row_tile(m, cap=4096):
    """Pick the row tile (multiple of 16 for bf16 sublane packing).

    Large tiles amortize the ~0.35us per-grid-step overhead.  We also force at
    least two (and an even number of) tiles whenever m allows it, so the
    single "parallel" grid axis keeps both v7x TensorCores busy; the cost on
    single-core v5e/v6e is one extra ~0.35us grid step (negligible).
    """
    m16 = _round_up(m, 16)
    if m16 <= 32:
        return m16
    n_tiles = max(2, pl.cdiv(m16, cap))
    if n_tiles % 2:
        n_tiles += 1
    return max(16, _round_up(pl.cdiv(m, n_tiles), 16))


def patch_embed_3d(x, proj_w, proj_b, *, patch_size, gamma=None, beta=None,
                   row_tile=None, compute_dtype=jnp.bfloat16):
    """PatchEmbed3D.forward.

    x:          (B, Cin, D, H, W)
    proj_w:     (E, Cin, p, p, p)   Conv3d weight (PyTorch layout)
    proj_b:     (E,)                Conv3d bias
    gamma/beta: optional (E,)       LayerNorm affine params (norm_layer case)
    returns:    (B, Dp*Hp*Wp, E)    dtype == x.dtype
    """
    B, Cin, D, H, W = x.shape
    p = int(patch_size)

    if p == 1:
        # self.proj is None: flatten(2).transpose(1, 2) (+ optional LayerNorm).
        # TODO(synk): Pallas-fuse this branch; the default config (patch_size=4)
        # always takes the projection path below.
        y = x.reshape(B, Cin, -1).transpose(0, 2, 1)
        if gamma is not None:
            mu = jnp.mean(y, axis=-1, keepdims=True)
            var = jnp.mean((y - mu) ** 2, axis=-1, keepdims=True)
            y = (y - mu) * jax.lax.rsqrt(var + LN_EPS) * gamma + beta
        return y

    assert D % p == 0 and H % p == 0 and W % p == 0, "volume not divisible by patch"
    E = proj_w.shape[0]
    Dp, Hp, Wp = D // p, H // p, W // p
    K = Cin * p * p * p
    M = B * Dp * Hp * Wp

    out_dtype = x.dtype
    cdt = compute_dtype if compute_dtype is not None else x.dtype

    # --- patch gather (im2col): cast first (halves any materialized bytes),
    # then a pure layout reshape + one transpose. allow_input_fusion below lets
    # XLA fuse this producer into the pallas_call input DMA so `cols` is not
    # materialized in HBM.
    cols = (x.astype(cdt)
             .reshape(B, Cin, Dp, p, Hp, p, Wp, p)
             .transpose(0, 2, 4, 6, 1, 3, 5, 7)           # (B,Dp,Hp,Wp,Cin,p,p,p)
             .reshape(M, K))
    w_t = proj_w.reshape(E, K).T.astype(cdt)               # (K, E), (c,kd,kh,kw) order
    b2d = proj_b.reshape(1, E).astype(jnp.float32)

    # --- row tiling: cdiv grid, ragged tail handled by Pallas masking ---------
    TM = row_tile if row_tile is not None else _choose_row_tile(M)
    grid_m = pl.cdiv(M, TM)

    def _const(shape):  # weight / bias / LN params stay resident across tiles
        return pl.BlockSpec(shape, lambda i: (0, 0))

    in_specs = [pl.BlockSpec((TM, K), lambda i: (i, 0)),
                _const((K, E)),
                _const((1, E))]
    inputs = [cols, w_t, b2d]
    if gamma is not None:
        in_specs += [_const((1, E)), _const((1, E))]
        inputs += [gamma.reshape(1, E).astype(jnp.float32),
                   beta.reshape(1, E).astype(jnp.float32)]
        kernel = _proj_norm_kernel
    else:
        kernel = _proj_kernel

    # TODO(synk): optionally pad E (96) to 128 for lane-dense stores; needs a
    # masked LN divisor and zero pad-gamma, and an output slice downstream.
    in_isz = np.dtype(cdt).itemsize
    cost = pl.CostEstimate(
        flops=2 * M * K * E,
        transcendentals=0,
        bytes_accessed=(M * K + K * E) * in_isz
                       + M * E * np.dtype(out_dtype).itemsize
                       + (3 if gamma is not None else 1) * E * 4,
    )

    out = pl.pallas_call(
        kernel,
        out_shape=jax.ShapeDtypeStruct((M, E), out_dtype),
        grid_spec=pltpu.PrefetchScalarGridSpec(
            num_scalar_prefetch=0,
            grid=(grid_m,),
            in_specs=in_specs,
            out_specs=pl.BlockSpec((TM, E), lambda i: (i, 0)),
        ),
        compiler_params=pltpu.CompilerParams(
            dimension_semantics=("parallel",),
            # Plenty for TM=4096 double-buffered tiles; <=48 MiB keeps headroom
            # under v7x's 64 MiB physical VMEM (v5e/v6e have 128 MiB).
            vmem_limit_bytes=48 * 1024 * 1024,
            # Allow the im2col cast/transpose feeding operand 0 to be fused
            # into the kernel's input path instead of a materialized HBM array.
            allow_input_fusion=[True] + [False] * (len(inputs) - 1),
        ),
        cost_estimate=cost,
    )(*inputs)

    return out.reshape(B, Dp * Hp * Wp, E)


# --------------------------------------------------------------------------- #
# Plain-JAX reference (mirrors PyTorch Conv3d -> flatten -> transpose -> LN)
# --------------------------------------------------------------------------- #
def _reference(x, proj_w, proj_b, patch_size, gamma=None, beta=None):
    B = x.shape[0]
    E = proj_w.shape[0]
    p = int(patch_size)
    y = jax.lax.conv_general_dilated(
        x, proj_w, window_strides=(p, p, p), padding="VALID",
        dimension_numbers=("NCDHW", "OIDHW", "NCDHW"))
    y = y + proj_b[None, :, None, None, None]
    y = y.reshape(B, E, -1).transpose(0, 2, 1)            # flatten(2).transpose(1,2)
    if gamma is not None:
        mu = jnp.mean(y, axis=-1, keepdims=True)
        var = jnp.mean((y - mu) ** 2, axis=-1, keepdims=True)
        y = (y - mu) / jnp.sqrt(var + LN_EPS) * gamma + beta
    return y


if __name__ == "__main__":
    # Small shapes consistent with the module: B=2, in_chans=1 (module default),
    # a 16^3 volume, patch_size=4 and embed_dim=96 (module defaults).
    B, Cin, S, P, E = 2, 1, 16, 4, 96
    key = jax.random.PRNGKey(0)
    kx, kw, kb, kg, kbe = jax.random.split(key, 5)

    x = jax.random.normal(kx, (B, Cin, S, S, S), dtype=jnp.float32)

    # Deterministic synthetic Conv3d(Cin, E, kernel=stride=P) parameters
    # (PyTorch default init: U(-1/sqrt(fan_in), 1/sqrt(fan_in))).
    fan_in = Cin * P * P * P
    bound = 1.0 / (fan_in ** 0.5)
    proj_w = jax.random.uniform(kw, (E, Cin, P, P, P), jnp.float32, -bound, bound)
    proj_b = jax.random.uniform(kb, (E,), jnp.float32, -bound, bound)

    # LayerNorm(E) params for the norm_layer=nn.LayerNorm configuration.
    gamma = 1.0 + 0.02 * jax.random.normal(kg, (E,), jnp.float32)
    beta = 0.02 * jax.random.normal(kbe, (E,), jnp.float32)

    fwd = jax.jit(patch_embed_3d,
                  static_argnames=("patch_size", "row_tile", "compute_dtype"))

    npatch = (S // P) ** 3

    # 1) Default fast path (bf16 operands, f32 accumulation), norm_layer=None.
    out = fwd(x, proj_w, proj_b, patch_size=P)
    jax.block_until_ready(out)
    ref = _reference(x, proj_w, proj_b, P)
    assert out.shape == (B, npatch, E), out.shape
    assert jnp.allclose(out, ref, atol=3e-2, rtol=3e-2), "mismatch (bf16, no norm)"

    # 2) Default fast path with norm_layer=nn.LayerNorm (LN fused in-kernel).
    out_n = fwd(x, proj_w, proj_b, patch_size=P, gamma=gamma, beta=beta)
    jax.block_until_ready(out_n)
    ref_n = _reference(x, proj_w, proj_b, P, gamma, beta)
    assert out_n.shape == (B, npatch, E), out_n.shape
    assert jnp.allclose(out_n, ref_n, atol=3e-2, rtol=3e-2), "mismatch (bf16, norm)"

    # 3) Full-f32 path: validates the kernel math with tight tolerance.
    out_f = fwd(x, proj_w, proj_b, patch_size=P, gamma=gamma, beta=beta,
                compute_dtype=jnp.float32)
    jax.block_until_ready(out_f)
    assert jnp.allclose(out_f, ref_n, atol=2e-3, rtol=2e-3), "mismatch (f32, norm)"

    print("KERNEL_OK")
</pallas_src>

<mosaic_0001>
module attributes {stable_mosaic.version = 11 : i64} {
  func.func @_proj_kernel(%arg0: i32, %arg1: memref<64x64xbf16, #tpu.memory_space<vmem>>, %arg2: memref<64x96xbf16, #tpu.memory_space<vmem>>, %arg3: memref<1x96xf32, #tpu.memory_space<vmem>>, %arg4: memref<64x96xf32, #tpu.memory_space<vmem>>) attributes {dimension_semantics = [#tpu.dimension_semantics<parallel>], iteration_bounds = array<i64: 2>, scalar_prefetch = 0 : i64, scratch_operands = 0 : i64, tpu.core_type = #tpu.core_type<tc>, window_params = [{transform_indices = @transform_0, window_bounds = array<i64: 64, 64>}, {pipeline_mode = #tpu.pipeline_mode<synchronous>, transform_indices = @transform_1, window_bounds = array<i64: 64, 96>}, {pipeline_mode = #tpu.pipeline_mode<synchronous>, transform_indices = @transform_2, window_bounds = array<i64: 1, 96>}, {transform_indices = @transform_3, window_bounds = array<i64: 64, 96>}]} {
    %c0 = arith.constant 0 : index
    %c0_0 = arith.constant 0 : index
    %0 = vector.load %arg1[%c0, %c0_0] : memref<64x64xbf16, #tpu.memory_space<vmem>>, vector<64x64xbf16>
    %c0_1 = arith.constant 0 : index
    %c0_2 = arith.constant 0 : index
    %1 = vector.load %arg2[%c0_1, %c0_2] : memref<64x96xbf16, #tpu.memory_space<vmem>>, vector<64x96xbf16>
    %cst = arith.constant dense<0.000000e+00> : vector<64x96xf32>
    %2 = tpu.matmul %0, %1, %cst {dimension_numbers = #tpu.dot_dimension_numbers<[1], [0], [0], [1], [0, 0, 1, 1], [], []>} : vector<64x64xbf16>, vector<64x96xbf16>, vector<64x96xf32> -> vector<64x96xf32>
    %c0_3 = arith.constant 0 : index
    %c0_4 = arith.constant 0 : index
    %3 = vector.load %arg3[%c0_3, %c0_4] : memref<1x96xf32, #tpu.memory_space<vmem>>, vector<1x96xf32>
    %4 = vector.broadcast %3 : vector<1x96xf32> to vector<64x96xf32>
    %5 = arith.addf %2, %4 : vector<64x96xf32>
    %c0_5 = arith.constant 0 : index
    %c0_6 = arith.constant 0 : index
    %6 = vector.load %arg4[%c0_5, %c0_6] : memref<64x96xf32, #tpu.memory_space<vmem>>, vector<64x96xf32>
    tpu.vector_store %arg4[%c0_5, %c0_6], %5 {strides = array<i32>} : memref<64x96xf32, #tpu.memory_space<vmem>>, vector<64x96xf32>,
    return
  }
  func.func @transform_0(%arg0: i32) -> (i32, i32) {
    %c0_i32 = arith.constant 0 : i32
    %c0_i32_0 = arith.constant 0 : i32
    return %arg0, %c0_i32 : i32, i32
  }
  func.func @transform_1(%arg0: i32) -> (i32, i32) {
    %c0_i32 = arith.constant 0 : i32
    %c0_i32_0 = arith.constant 0 : i32
    %c0_i32_1 = arith.constant 0 : i32
    return %c0_i32, %c0_i32_0 : i32, i32
  }
  func.func @transform_2(%arg0: i32) -> (i32, i32) {
    %c0_i32 = arith.constant 0 : i32
    %c0_i32_0 = arith.constant 0 : i32
    %c0_i32_1 = arith.constant 0 : i32
    return %c0_i32, %c0_i32_0 : i32, i32
  }
  func.func @transform_3(%arg0: i32) -> (i32, i32) {
    %c0_i32 = arith.constant 0 : i32
    %c0_i32_0 = arith.constant 0 : i32
    return %arg0, %c0_i32 : i32, i32
  }
}

</mosaic_0001>

<bundles_post_ra>
// kernel: patch_embed_3d.1
= control target key start
LH: loop header
LB: loop body
LE: loop exit
PB: predicated region body
PF: predicated region fallthrough
CT: control target
= control target key end

     0   :  { %8 = vsyncpa [#allocation3], 0  ;;  %s674_s0 = inlined_call_operand.vmem [shape: bf16[128,64], index: 0, kind: input, shape index: {}]   ;;  %s675_s1 = inlined_call_operand.vmem [shape: bf16[64,96], index: 1, kind: input, shape index: {}]   ;;  %s676_s2 = inlined_call_operand.vmem [shape: f32[1,96], index: 2, kind: input, shape index: {}]   ;;  %s677_s3 = inlined_call_operand.hbm [shape: f32[128,96], index: 3, kind: output, shape index: {}]  }
   0x1   :  { %10 = vsyncpa [#allocation3 + $0x1], 0  ;;  %s563_s12 = smov 0   ;;  %s565_s13 = smov 0  }
   0x2   :  { %s567_s14 = smov 0   ;;  %s569_s15 = smov 0  }
   0x3 LB: > { %s584_s16 = sadd.s32 4294967295, %s539_s15   ;;  %s366_s17 = sadd.s32 4294967294, %s539_s15   ;;  %s539_s15 = sphi %s569_s15, %s683_s15   ;;  %s535_s14 = sphi %s567_s14, %s682_s14   ;;  %s531_s13 = sphi %s565_s13, %s681_s13   ;;  %s527_s12 = sphi %s563_s12, %s680_s12  }
   0x4   : > { %s588_s18 = sadd.s32 1, %s539_s15   ;;  %s91_s19 = sadd.s32 1, %s535_s14 }
   0x5   : > { %s88_s20 = ssub.s32 %s539_s15, %s588_s18  ;;  %p101_p0 = scmp.ne.s32.totalorder %s535_s14, %s531_s13 }
   0x6   : > { %p89_p1 = scmp.eq.s32.totalorder %s88_s20, 0  ;;  %p102_p2 = scmp.eq.s32.totalorder %s584_s16, 1 }
   0x7   : > { %p107_p3 = scmp.ne.s32.totalorder %s531_s13, %s527_s12  ;;  %p108_p4 = scmp.eq.s32.totalorder %s366_s17, 1 }
   0x8   : > { %s599_s21 = scalar_select %p89_p1, %s535_s14, %s91_s19  }
   0x9   : > { %p601_p5 = por %p102_p2, %p101_p0  ;;  %p605_p6 = por %p108_p4, %p107_p3 }
   0xa   : > { %p369_p7 = scmp.ge.s32.totalorder %s539_s15, 1  ;;  %p141_p8 = scmp.lt.s32.totalorder %s539_s15, 3 }
   0xc   : > { %p142_p9 = pnand %p369_p7, %p141_p8 }
   0xd   : > { %s371_s26 = sshll.u32 (!%p142_p9), %s584_s16, 3  ;;  %s162_s10 = sand.u32 (!%p142_p9), 1, %s531_s13  }
   0xe   : > { %145 = sbr.rel (%p142_p9) target bundleno = 183 (0xb7), region = 32  ;;  %p166_p10 = scmp.lt.s32.totalorder (!%p142_p9), %s371_s26, 15 }
   0xf   : > { %s370_s11 = sshll.u32 (!%p142_p9), %s162_s10, 6  ;;  %s422_s24 = sshll.u32 (!%p142_p9), %s584_s16, 6 }
  0x10   : > { %s164_s20 = scalar_lea.vmem (!%p142_p9), [#allocation2], %s370_s11  ;;  %s300_s27 = scalar_lea.hbm (!%p142_p9), %s677_s3, %s422_s24 }
  0x11   : > { %s301_s16 = sshll.u32 (!%p142_p9), %s164_s20, 4  ;;  %s303_s28 = sshll.u32 (!%p142_p9), %s300_s27, 4  ;;  %s302_s16 = int_to_ptr.vmem [resolvable:$true] %s301_s16  ;;  %s304_s28 = int_to_ptr.hbm [resolvable:$true] %s303_s28 }
  0x12   : > { %s289_s29 = scalar_lea.sflag (!%p142_p9), [#allocation3], %s162_s10  ;;  %s491_s30 = sshra.s32 (!%p142_p9), %s304_s28, 4  ;;  %s492_s30 = int_to_ptr.hbm [resolvable:$true] %s491_s30 }
  0x13   : > { %v421_v0 = vld [vmem:[%s675_s1 + $0x18] sm:$0xff]  ;;  %v420_v1 = vld [vmem:[%s675_s1 + $0x10] sm:$0xff]  ;;  %s685_s26 = smov (!%p166_p10, %s371_s26), 15  ;;  %v419_v2 = vld [vmem:[%s675_s1 + $0x8] sm:$0xff]  ;;  %vm237_vm0 = vcmask 523264   ;;  %vm279_vm1 = vcmask 785408   ;;  %p498_p0 = scmp.lt.s32.totalorder %s492_s30, %s677_s3 }
  0x14   : > { %254 = vmatpush.bf16.msra.mxu0 %v421_v0  ;;  %423 = vmatpush.bf16.msra.mxu1 %v421_v0  ;;  %s372_s4 = sshll.u32 %s685_s26, 2  ;;  %v418_v3 = vld [vmem:[%s675_s1] sm:$0xff]  ;;  %s497_s7 = scalar_lea.hbm %s677_s3, 128 }
  0x15   : > { %424 = vmatpush.bf16.msra.mxu2 %v421_v0  ;;  %425 = vmatpush.bf16.msra.mxu3 %v421_v0  ;;  %s169_s9 = scalar_lea.vmem %s674_s0, %s372_s4  ;;  %v476_v8 = vld [vmem:[%s676_s2] ss:$0 sm:$0xff]  ;;  %s493_s4 = scalar_lea.hbm %s492_s30, 64 }
  0x16   : > { %v414_v4 = vld [vmem:[%s169_s9] sm:$0xff]  ;;  %v415_v5 = vld [vmem:[%s169_s9 + $0x8] sm:$0xff]  ;;  %v416_v6 = vld [vmem:[%s169_s9 + $0x10] sm:$0xff]  ;;  %p494_p11 = scmp.ne.s32.totalorder %s492_s30, %s493_s4  ;;  %p499_p1 = scmp.lt.s32.totalorder %s497_s7, %s493_s4 }
  0x17   : > { %v417_v7 = vld [vmem:[%s169_s9 + $0x18] sm:$0xff] }
  0x18   : > { %255 = vmatpush.bf16.msra.mxu0 %v420_v1  ;;  %426 = vmatpush.bf16.msra.mxu1 %v420_v1  ;;  %p495_p12 = pnand %p494_p11, %p601_p5  ;;  %p500_p2 = por %p499_p1, %p498_p0 }
  0x19   : > { %427 = vmatpush.bf16.msra.mxu2 %v420_v1  ;;  %428 = vmatpush.bf16.msra.mxu3 %v420_v1 }
  0x1a   : > { %p496_p13 = pneg %p495_p12 }
  0x1c   : > { %256 = vmatpush.bf16.msra.mxu0 %v419_v2  ;;  %429 = vmatpush.bf16.msra.mxu1 %v419_v2  ;;  %p501_p3 = pnand %p500_p2, %p496_p13 }
  0x1d   : > { %430 = vmatpush.bf16.msra.mxu2 %v419_v2  ;;  %431 = vmatpush.bf16.msra.mxu3 %v419_v2 }
  0x20   : > { %257 = vmatpush.bf16.msra.mxu0 %v418_v3  ;;  %432 = vmatpush.bf16.msra.mxu1 %v418_v3 }
  0x21   : > { %433 = vmatpush.bf16.msra.mxu2 %v418_v3  ;;  %434 = vmatpush.bf16.msra.mxu3 %v418_v3 }
  0x23   : > { %405 = vmatmul.msk.bf16.vlgmr.msra.gmra.mxu0 %vm237_vm0, %v414_v4  ;;  %406 = vmatmul.msk.bf16.vlgmr.msra.gmra.mxu1 %vm237_vm0, %v415_v5 }
  0x24   : > { %407 = vmatmul.msk.bf16.vlgmr.msra.gmra.mxu2 %vm237_vm0, %v416_v6  ;;  %408 = vmatmul.msk.bf16.vlgmr.msra.gmra.mxu3 %vm237_vm0, %v417_v7 }
  0xa0   : > { %v259_v9 = vpop.f32.mrf.mxu0  ;;  %v264_v10 = vpop.f32.mrf.mxu1 }
  0xa1   : > { %v260_v11 = vadd.f32 %v476_v8, %v259_v9  ;;  %v265_v12 = vadd.f32 %v476_v8, %v264_v10 }
  0xa3   : > { %280 = vst.msk [vmem:[%s164_s20] sm:$0xff] %vm279_vm1, %v260_v11 }
  0xa4   : > { %282 = vst.msk [vmem:[%s164_s20 + $0x10] sm:$0xff] %vm279_vm1, %v265_v12 }
  0xa7   : > { %v269_v13 = vpop.f32.mrf.mxu2  ;;  %v274_v14 = vpop.f32.mrf.mxu3 }
  0xa8   : > { %v270_v15 = vadd.f32 %v476_v8, %v269_v13  ;;  %v275_v16 = vadd.f32 %v476_v8, %v274_v14  ;;  %v261_v17 = vpop.f32.mrf.mxu0  ;;  %v266_v18 = vpop.f32.mrf.mxu1 }
  0xa9   : > { %v262_v19 = vadd.f32 %v476_v8, %v261_v17  ;;  %v267_v20 = vadd.f32 %v476_v8, %v266_v18 }
  0xaa   : > { %284 = vst.msk [vmem:[%s164_s20 + $0x20] sm:$0xff] %vm279_vm1, %v270_v15 }
  0xab   : > { %286 = vst.msk [vmem:[%s164_s20 + $0x30] sm:$0xff] %vm279_vm1, %v275_v16 }
  0xac   : > { %281 = vst.msk [vmem:[%s164_s20 + $0x8] sm:$0xff] %vm279_vm1, %v262_v19 }
  0xad   : > { %283 = vst.msk [vmem:[%s164_s20 + $0x18] sm:$0xff] %vm279_vm1, %v267_v20 }
  0xaf   : > { %v271_v21 = vpop.f32.mrf.mxu2  ;;  %v276_v22 = vpop.f32.mrf.mxu3 }
  0xb0   : > { %v272_v23 = vadd.f32 %v476_v8, %v271_v21  ;;  %v277_v24 = vadd.f32 %v476_v8, %v276_v22 }
  0xb2   : > { %285 = vst.msk [vmem:[%s164_s20 + $0x28] sm:$0xff] %vm279_vm1, %v272_v23 }
  0xb3   : > { %287 = vst.msk [vmem:[%s164_s20 + $0x38] sm:$0xff] %vm279_vm1, %v277_v24 }
  0xb4   : > { %504 = shalt.err (!%p501_p3)
}
  0xb5   : > { %s541_s10 = smov 128   ;;  %s542_s11 = smov 8  }
  0xb6   : > { %435 = dma.vmem_to_hbm [thread:$0]  (%p601_p5), %s302_s16, 1024, %s304_s28, %s289_s29, %s541_s10, %s541_s10, %s542_s11  }
  0xb7 PF: > { %p441_p4 = scmp.ge.s32.totalorder %s539_s15, 2  ;;  %s318_s17 = sand.u32 1, %s527_s12  }
  0xb8   : > { %s319_s19 = scalar_lea.sflag [#allocation3], %s318_s17 }
  0xb9   : > { %p438_p7 = pnand %p441_p4, %p605_p6 }
  0xbb   : > { %p439_p8 = pneg %p438_p7 }
  0xbd   : > { %522 = dma.done.wait (%p439_p8), %s319_s19, 1024  }
  0xbe   : > { %524 = vsyncadd (%p439_p8), %s319_s19, 4294966272  ;;  %p13_p9 = scmp.ge.s32.totalorder %s588_s18, 4   ;;  %s680_s12 = smov %s531_s13 }
  0xbf   : > { %s681_s13 = smov %s535_s14  ;;  %s682_s14 = smov %s599_s21 }
  0xc0   : > { %s683_s15 = smov %s588_s18  ;;  %15 = sbr.rel (!%p13_p9) target bundleno = 3 (0x3), region = 67 }
  0xc5   :  { %325 = vsyncpa [#allocation3], 1 }
  0xc6   :  { %327 = vsyncpa [#allocation3 + $0x1], 1 }

</bundles_post_ra>
